<compile_context>
chip_gen: v6e
topology: v6e:2x2x1
jax: 0.10.0
libtpu: 0.0.40
codegen_flags: <defaults>
</compile_context>

<pallas_src>
from functools import partial

import jax
import jax.numpy as jnp
from jax.experimental import pallas as pl
from jax.experimental.pallas import tpu as pltpu

_HAS_BUFFERED = hasattr(pl, "Buffered")  # decided once; no per-call fallback


def adapter_wrapper_kernel(x_ref, w0_ref, b0_ref, w01_ref, b01_ref,
                           w2_ref, b2_ref, o_ref):
    x = x_ref[...]                                               # bf16 (tm, Din)

    # wrapped original Linear -> residual base, stored straight into o_ref
    orig = jnp.dot(x, w0_ref[...], preferred_element_type=jnp.float32)
    o_ref[...] = (orig + b0_ref[...]).astype(o_ref.dtype)        # (tm, D)

    # pre-fused adapter down-projection (depends only on x) + ReLU
    h = jnp.dot(x, w01_ref[...], preferred_element_type=jnp.float32)
    h = jnp.maximum(h + b01_ref[...], 0.0)                       # (tm, Mp) f32

    # adapter up-projection + residual accumulate into the output
    y = jnp.dot(h.astype(w2_ref.dtype), w2_ref[...],
                preferred_element_type=jnp.float32)
    o_ref[...] = (o_ref[...] + y + b2_ref[...]).astype(o_ref.dtype)


def _round_up(x, m):
    return ((x + m - 1) // m) * m


def _choose_tm(T, tm_max):
    Tr = _round_up(T, 8)
    if Tr <= tm_max:
        # all tokens fit in one slab; when there is enough work, split into two
        # tiles so a megacore (v7x, 2 TCs) can shard the "parallel" grid axis
        if Tr >= 2048:
            return _round_up((Tr + 1) // 2, 8)
        return Tr
    return tm_max


def _const_spec(shape):
    # constant index_map -> operand stays resident across the token grid;
    # a single buffer is enough (no pointless double-buffer DMA/VMEM).
    if _HAS_BUFFERED:
        return pl.BlockSpec(shape, lambda i: (0, 0),
                            pipeline_mode=pl.Buffered(1))
    return pl.BlockSpec(shape, lambda i: (0, 0))


def _build_call(Tp, Din, D, Mp, out_dtype, tm):
    flops = 2 * Tp * (Din * D + Din * Mp + Mp * D)
    bytes_accessed = (Tp * Din * 2 + Tp * D * 4              # x in (bf16), out (f32)
                      + (Din * D + Din * Mp + Mp * D) * 2    # bf16 weights, read once
                      + (2 * D + Mp) * 4)                    # f32 biases
    return pl.pallas_call(
        adapter_wrapper_kernel,
        out_shape=jax.ShapeDtypeStruct((Tp, D), out_dtype),
        grid_spec=pltpu.PrefetchScalarGridSpec(
            num_scalar_prefetch=0,
            grid=(Tp // tm,),
            in_specs=[
                pl.BlockSpec((tm, Din), lambda i: (i, 0)),   # x tile (streamed)
                _const_spec((Din, D)),                       # W0    (resident)
                _const_spec((1, D)),                         # b0
                _const_spec((Din, Mp)),                      # W0@W1 (resident)
                _const_spec((1, Mp)),                        # b0@W1 + b1
                _const_spec((Mp, D)),                        # W2    (resident)
                _const_spec((1, D)),                         # b2
            ],
            out_specs=pl.BlockSpec((tm, D), lambda i: (i, 0)),
        ),
        compiler_params=pltpu.CompilerParams(
            dimension_semantics=("parallel",),
            vmem_limit_bytes=32 * 1024 * 1024,
        ),
        cost_estimate=pl.CostEstimate(
            flops=flops, transcendentals=0, bytes_accessed=bytes_accessed),
    )


@partial(jax.jit, static_argnames=("tm",))
def _adapter_wrapper_impl(x2d, w0, b0, w1, b1, w2, b2, tm):
    T, Din = x2d.shape
    D = w0.shape[1]
    M = w1.shape[1]
    out_dtype = x2d.dtype

    # ---- weight prep (fused under the same jit; runs once per compile shape)
    # Pre-fuse the down-projection: (x@W0 + b0)@W1 + b1 == x@(W0@W1) + (b0@W1+b1)
    w01 = jnp.dot(w0, w1, preferred_element_type=jnp.float32)    # (Din, M)
    b01 = jnp.dot(b0, w1, preferred_element_type=jnp.float32) + b1

    # Pad the bottleneck dim to a full 128-lane vreg width.  Extra W01 columns
    # / b01 entries / W2 rows are zero, ReLU(0)=0 -> exact.
    Mp = max(128, _round_up(M, 128))
    if Mp != M:
        w01 = jnp.pad(w01, ((0, 0), (0, Mp - M)))
        b01 = jnp.pad(b01, ((0, 0), (0, Mp - M)))
        w2p = jnp.pad(w2, ((0, Mp - M), (0, 0)))
    else:
        w2p = w2

    # bf16 MXU operands, f32 accumulation (biases stay f32, added post-MXU).
    x_bf = x2d.astype(jnp.bfloat16)
    w0_bf = w0.astype(jnp.bfloat16)
    w01_bf = w01.astype(jnp.bfloat16)
    w2_bf = w2p.astype(jnp.bfloat16)
    b0_f = b0.astype(jnp.float32)
    b01_f = b01.astype(jnp.float32)
    b2_f = b2.astype(jnp.float32)

    # ---- token tiling (pad inside the jit so XLA fuses it; slice back at end)
    tm_eff = _choose_tm(T, tm)
    Tp = _round_up(T, tm_eff)
    if Tp != T:
        x_bf = jnp.pad(x_bf, ((0, Tp - T), (0, 0)))

    out = _build_call(Tp, Din, D, Mp, out_dtype, tm_eff)(
        x_bf, w0_bf, b0_f, w01_bf, b01_f, w2_bf, b2_f)
    return out[:T]


def adapter_wrapper_forward(x2d, w0, b0, w1, b1, w2, b2, *, tm=2048):
    """x2d: (T, Din).  Weights pre-transposed for row-major x @ W:
    w0: (Din, D), b0: (1, D), w1: (D, M), b1: (1, M), w2: (M, D), b2: (1, D)."""
    return _adapter_wrapper_impl(x2d, w0, b0, w1, b1, w2, b2, tm)


def init_params(key, in_features=384, in_dim=512, reduction_factor=32, std=0.1):
    """orig_layer modeled as the nn.Linear it wraps (out_features = in_dim);
    adapter weights follow the torch init: normal(0, std) clamped to +-2*std."""
    m = in_dim // reduction_factor
    k0, k1, k2, kb0, kb1, kb2 = jax.random.split(key, 6)
    lim0 = 1.0 / float(in_features) ** 0.5
    w0 = jax.random.uniform(k0, (in_features, in_dim), jnp.float32, -lim0, lim0)
    b0 = jax.random.uniform(kb0, (1, in_dim), jnp.float32, -lim0, lim0)
    w1 = jnp.clip(jax.random.normal(k1, (in_dim, m), jnp.float32) * std,
                  -2.0 * std, 2.0 * std)
    w2 = jnp.clip(jax.random.normal(k2, (m, in_dim), jnp.float32) * std,
                  -2.0 * std, 2.0 * std)
    lim1 = 1.0 / float(in_dim) ** 0.5
    b1 = jax.random.uniform(kb1, (1, m), jnp.float32, -lim1, lim1)
    lim2 = 1.0 / float(m) ** 0.5
    b2 = jax.random.uniform(kb2, (1, in_dim), jnp.float32, -lim2, lim2)
    return w0, b0, w1, b1, w2, b2


def adapter_wrapper_ref(x2d, w0, b0, w1, b1, w2, b2):
    orig = x2d @ w0 + b0
    h = jnp.maximum(orig @ w1 + b1, 0.0)
    return h @ w2 + b2 + orig


if __name__ == "__main__":
    in_features = 384        # orig_layer.in_features
    in_dim = 512             # orig_layer.out_features == Adapter in_dim
    reduction_factor = 32    # bottleneck m = 16 (padded to 128 inside wrapper)
    batch, seq = 2, 8

    key = jax.random.PRNGKey(0)
    kx, kp = jax.random.split(key)
    x = jax.random.normal(kx, (batch, seq, in_features), dtype=jnp.float32)
    params = init_params(kp, in_features, in_dim, reduction_factor)

    x2d = x.reshape(batch * seq, in_features)
    out2d = adapter_wrapper_forward(x2d, *params)
    out = out2d.reshape(batch, seq, in_dim)
    jax.block_until_ready(out)

    # correctness check vs pure-f32 reference of AdapterWrapper.forward.
    # Tolerance is loosened because the kernel feeds the MXU bf16 operands
    # (f32 accumulation) per the performance review.
    ref = adapter_wrapper_ref(x2d, *params).reshape(batch, seq, in_dim)
    max_err = float(jnp.max(jnp.abs(out - ref)))
    assert jnp.allclose(out, ref, atol=5e-2, rtol=5e-2), (
        f"mismatch vs reference, max abs err = {max_err}")

    print("KERNEL_OK")
</pallas_src>

<mosaic_0001>
module attributes {stable_mosaic.version = 11 : i64} {
  func.func @adapter_wrapper_kernel(%arg0: i32, %arg1: memref<16x384xbf16, #tpu.memory_space<vmem>>, %arg2: memref<384x512xbf16, #tpu.memory_space<vmem>>, %arg3: memref<1x512xf32, #tpu.memory_space<vmem>>, %arg4: memref<384x128xbf16, #tpu.memory_space<vmem>>, %arg5: memref<1x128xf32, #tpu.memory_space<vmem>>, %arg6: memref<128x512xbf16, #tpu.memory_space<vmem>>, %arg7: memref<1x512xf32, #tpu.memory_space<vmem>>, %arg8: memref<16x512xf32, #tpu.memory_space<vmem>>) attributes {dimension_semantics = [#tpu.dimension_semantics<parallel>], iteration_bounds = array<i64: 1>, scalar_prefetch = 0 : i64, scratch_operands = 0 : i64, tpu.core_type = #tpu.core_type<tc>, window_params = [{transform_indices = @transform_0, window_bounds = array<i64: 16, 384>}, {pipeline_mode = #tpu.pipeline_mode<synchronous>, transform_indices = @transform_1, window_bounds = array<i64: 384, 512>}, {pipeline_mode = #tpu.pipeline_mode<synchronous>, transform_indices = @transform_2, window_bounds = array<i64: 1, 512>}, {pipeline_mode = #tpu.pipeline_mode<synchronous>, transform_indices = @transform_3, window_bounds = array<i64: 384, 128>}, {pipeline_mode = #tpu.pipeline_mode<synchronous>, transform_indices = @transform_4, window_bounds = array<i64: 1, 128>}, {pipeline_mode = #tpu.pipeline_mode<synchronous>, transform_indices = @transform_5, window_bounds = array<i64: 128, 512>}, {pipeline_mode = #tpu.pipeline_mode<synchronous>, transform_indices = @transform_6, window_bounds = array<i64: 1, 512>}, {transform_indices = @transform_7, window_bounds = array<i64: 16, 512>}]} {
    %c0 = arith.constant 0 : index
    %c0_0 = arith.constant 0 : index
    %0 = vector.load %arg1[%c0, %c0_0] : memref<16x384xbf16, #tpu.memory_space<vmem>>, vector<16x384xbf16>
    %c0_1 = arith.constant 0 : index
    %c0_2 = arith.constant 0 : index
    %1 = vector.load %arg2[%c0_1, %c0_2] : memref<384x512xbf16, #tpu.memory_space<vmem>>, vector<384x512xbf16>
    %cst = arith.constant dense<0.000000e+00> : vector<16x512xf32>
    %2 = tpu.matmul %0, %1, %cst {dimension_numbers = #tpu.dot_dimension_numbers<[1], [0], [0], [1], [0, 0, 1, 1], [], []>} : vector<16x384xbf16>, vector<384x512xbf16>, vector<16x512xf32> -> vector<16x512xf32>
    %c0_3 = arith.constant 0 : index
    %c0_4 = arith.constant 0 : index
    %3 = vector.load %arg3[%c0_3, %c0_4] : memref<1x512xf32, #tpu.memory_space<vmem>>, vector<1x512xf32>
    %4 = vector.broadcast %3 : vector<1x512xf32> to vector<16x512xf32>
    %5 = arith.addf %2, %4 : vector<16x512xf32>
    %c0_5 = arith.constant 0 : index
    %c0_6 = arith.constant 0 : index
    %6 = vector.load %arg8[%c0_5, %c0_6] : memref<16x512xf32, #tpu.memory_space<vmem>>, vector<16x512xf32>
    tpu.vector_store %arg8[%c0_5, %c0_6], %5 {strides = array<i32>} : memref<16x512xf32, #tpu.memory_space<vmem>>, vector<16x512xf32>,
    %c0_7 = arith.constant 0 : index
    %c0_8 = arith.constant 0 : index
    %7 = vector.load %arg4[%c0_7, %c0_8] : memref<384x128xbf16, #tpu.memory_space<vmem>>, vector<384x128xbf16>
    %cst_9 = arith.constant dense<0.000000e+00> : vector<16x128xf32>
    %8 = tpu.matmul %0, %7, %cst_9 {dimension_numbers = #tpu.dot_dimension_numbers<[1], [0], [0], [1], [0, 0, 1, 1], [], []>} : vector<16x384xbf16>, vector<384x128xbf16>, vector<16x128xf32> -> vector<16x128xf32>
    %c0_10 = arith.constant 0 : index
    %c0_11 = arith.constant 0 : index
    %9 = vector.load %arg5[%c0_10, %c0_11] : memref<1x128xf32, #tpu.memory_space<vmem>>, vector<1x128xf32>
    %10 = vector.broadcast %9 : vector<1x128xf32> to vector<16x128xf32>
    %11 = arith.addf %8, %10 : vector<16x128xf32>
    %cst_12 = arith.constant 0.000000e+00 : f32
    %12 = vector.broadcast %cst_12 : f32 to vector<16x128xf32>
    %13 = arith.maximumf %11, %12 : vector<16x128xf32>
    %14 = arith.truncf %13 : vector<16x128xf32> to vector<16x128xbf16>
    %c0_13 = arith.constant 0 : index
    %c0_14 = arith.constant 0 : index
    %15 = vector.load %arg6[%c0_13, %c0_14] : memref<128x512xbf16, #tpu.memory_space<vmem>>, vector<128x512xbf16>
    %cst_15 = arith.constant dense<0.000000e+00> : vector<16x512xf32>
    %16 = tpu.matmul %14, %15, %cst_15 {dimension_numbers = #tpu.dot_dimension_numbers<[1], [0], [0], [1], [0, 0, 1, 1], [], []>} : vector<16x128xbf16>, vector<128x512xbf16>, vector<16x512xf32> -> vector<16x512xf32>
    %c0_16 = arith.constant 0 : index
    %c0_17 = arith.constant 0 : index
    %17 = vector.load %arg8[%c0_16, %c0_17] : memref<16x512xf32, #tpu.memory_space<vmem>>, vector<16x512xf32>
    %18 = arith.addf %17, %16 : vector<16x512xf32>
    %c0_18 = arith.constant 0 : index
    %c0_19 = arith.constant 0 : index
    %19 = vector.load %arg7[%c0_18, %c0_19] : memref<1x512xf32, #tpu.memory_space<vmem>>, vector<1x512xf32>
    %20 = vector.broadcast %19 : vector<1x512xf32> to vector<16x512xf32>
    %21 = arith.addf %18, %20 : vector<16x512xf32>
    %c0_20 = arith.constant 0 : index
    %c0_21 = arith.constant 0 : index
    %22 = vector.load %arg8[%c0_20, %c0_21] : memref<16x512xf32, #tpu.memory_space<vmem>>, vector<16x512xf32>
    tpu.vector_store %arg8[%c0_20, %c0_21], %21 {strides = array<i32>} : memref<16x512xf32, #tpu.memory_space<vmem>>, vector<16x512xf32>,
    return
  }
  func.func @transform_0(%arg0: i32) -> (i32, i32) {
    %c0_i32 = arith.constant 0 : i32
    %c0_i32_0 = arith.constant 0 : i32
    return %arg0, %c0_i32 : i32, i32
  }
  func.func @transform_1(%arg0: i32) -> (i32, i32) {
    %c0_i32 = arith.constant 0 : i32
    %c0_i32_0 = arith.constant 0 : i32
    %c0_i32_1 = arith.constant 0 : i32
    return %c0_i32, %c0_i32_0 : i32, i32
  }
  func.func @transform_2(%arg0: i32) -> (i32, i32) {
    %c0_i32 = arith.constant 0 : i32
    %c0_i32_0 = arith.constant 0 : i32
    %c0_i32_1 = arith.constant 0 : i32
    return %c0_i32, %c0_i32_0 : i32, i32
  }
  func.func @transform_3(%arg0: i32) -> (i32, i32) {
    %c0_i32 = arith.constant 0 : i32
    %c0_i32_0 = arith.constant 0 : i32
    %c0_i32_1 = arith.constant 0 : i32
    return %c0_i32, %c0_i32_0 : i32, i32
  }
  func.func @transform_4(%arg0: i32) -> (i32, i32) {
    %c0_i32 = arith.constant 0 : i32
    %c0_i32_0 = arith.constant 0 : i32
    %c0_i32_1 = arith.constant 0 : i32
    return %c0_i32, %c0_i32_0 : i32, i32
  }
  func.func @transform_5(%arg0: i32) -> (i32, i32) {
    %c0_i32 = arith.constant 0 : i32
    %c0_i32_0 = arith.constant 0 : i32
    %c0_i32_1 = arith.constant 0 : i32
    return %c0_i32, %c0_i32_0 : i32, i32
  }
  func.func @transform_6(%arg0: i32) -> (i32, i32) {
    %c0_i32 = arith.constant 0 : i32
    %c0_i32_0 = arith.constant 0 : i32
    %c0_i32_1 = arith.constant 0 : i32
    return %c0_i32, %c0_i32_0 : i32, i32
  }
  func.func @transform_7(%arg0: i32) -> (i32, i32) {
    %c0_i32 = arith.constant 0 : i32
    %c0_i32_0 = arith.constant 0 : i32
    return %arg0, %c0_i32 : i32, i32
  }
}

</mosaic_0001>

<bundles_post_ra>
// kernel: _adapter_wrapper_impl.1
= control target key start
LH: loop header
LB: loop body
LE: loop exit
PB: predicated region body
PF: predicated region fallthrough
CT: control target
= control target key end

     0   :  { %v1913_v2 = vmov 0   ;;  %s2471_s0 = inlined_call_operand.vmem [shape: bf16[16,384], index: 0, kind: input, shape index: {}]   ;;  %s2472_s1 = inlined_call_operand.vmem [shape: bf16[384,512], index: 1, kind: input, shape index: {}]   ;;  %s2473_s2 = inlined_call_operand.vmem [shape: f32[1,512], index: 2, kind: input, shape index: {}]   ;;  %s2474_s3 = inlined_call_operand.vmem [shape: bf16[384,128], index: 3, kind: input, shape index: {}]   ;;  %s2475_s4 = inlined_call_operand.vmem [shape: f32[1,128], index: 4, kind: input, shape index: {}]   ;;  %s2476_s5 = inlined_call_operand.vmem [shape: bf16[128,512], index: 5, kind: input, shape index: {}]   ;;  %s2477_s6 = inlined_call_operand.vmem [shape: f32[1,512], index: 6, kind: input, shape index: {}]   ;;  %s2478_s7 = inlined_call_operand.hbm [shape: f32[16,512], index: 7, kind: output, shape index: {}]  }
   0x1   :  { %v1671_v0 = vld [vmem:[%s2472_s1 + $0xe4] ss:$16 sps:$4 sm:$0xff]   ;;  %721 = vmatprep.mubr.bf16.mxu1 %v1913_v2  ;;  %v1675_v3 = vld [vmem:[%s2472_s1 + $0xe0] ss:$16 sps:$4 sm:$0xff]   ;;  %v1723_v34 = vld [vmem:[%s2472_s1 + $0xec] ss:$16 sps:$4 sm:$0xff]  }
   0x2   :  { %v1673_v1 = vld [vmem:[%s2472_s1 + $0x2e4] ss:$16 sps:$4 sm:$0xff]   ;;  %646 = vmatprep.subr.bf16.mxu0 %v1671_v0  ;;  %v1676_v4 = vld [vmem:[%s2472_s1 + $0x2e0] ss:$16 sps:$4 sm:$0xff]   ;;  %v1721_v36 = vld [vmem:[%s2472_s1 + $0xe8] ss:$16 sps:$4 sm:$0xff]  }
   0x3   :  { %689 = vmatprep.subr.bf16.mxu1 %v1673_v1  ;;  %v1677_v5 = vld [vmem:[%s2472_s1 + $0xc4] ss:$16 sps:$4 sm:$0xff]   ;;  %647 = vmatpush1.bf16.msra.mxu0 %v1675_v3  ;;  %v1681_v7 = vld [vmem:[%s2472_s1 + $0xc0] ss:$16 sps:$4 sm:$0xff]   ;;  %v1730_v39 = vld [vmem:[%s2472_s1 + $0xcc] ss:$16 sps:$4 sm:$0xff]  }
   0x4   :  { %690 = vmatpush1.bf16.msra.mxu1 %v1676_v4  ;;  %v1679_v6 = vld [vmem:[%s2472_s1 + $0x2c4] ss:$16 sps:$4 sm:$0xff]   ;;  %648 = vmatprep.subr.bf16.mxu0 %v1677_v5  ;;  %v1682_v8 = vld [vmem:[%s2472_s1 + $0x2c0] ss:$16 sps:$4 sm:$0xff]   ;;  %v1728_v40 = vld [vmem:[%s2472_s1 + $0xc8] ss:$16 sps:$4 sm:$0xff]  }
   0x5   :  { %691 = vmatprep.subr.bf16.mxu1 %v1679_v6  ;;  %v1683_v9 = vld [vmem:[%s2472_s1 + $0xa4] ss:$16 sps:$4 sm:$0xff]   ;;  %v1687_v11 = vld [vmem:[%s2472_s1 + $0xa0] ss:$16 sps:$4 sm:$0xff]   ;;  %v1736_v43 = vld [vmem:[%s2472_s1 + $0xac] ss:$16 sps:$4 sm:$0xff]  }
   0x6   :  { %v1685_v10 = vld [vmem:[%s2472_s1 + $0x2a4] ss:$16 sps:$4 sm:$0xff]   ;;  %v1688_v12 = vld [vmem:[%s2472_s1 + $0x2a0] ss:$16 sps:$4 sm:$0xff]   ;;  %v1734_v44 = vld [vmem:[%s2472_s1 + $0xa8] ss:$16 sps:$4 sm:$0xff]  }
   0x7   :  { %649 = vmatpush1.bf16.msra.mxu0 %v1681_v7  ;;  %v1689_v13 = vld [vmem:[%s2472_s1 + $0x84] ss:$16 sps:$4 sm:$0xff]   ;;  %v1693_v15 = vld [vmem:[%s2472_s1 + $0x80] ss:$16 sps:$4 sm:$0xff]   ;;  %v1742_v47 = vld [vmem:[%s2472_s1 + $0x8c] ss:$16 sps:$4 sm:$0xff]  }
   0x8   :  { %692 = vmatpush1.bf16.msra.mxu1 %v1682_v8  ;;  %650 = vmatprep.subr.bf16.mxu0 %v1683_v9  ;;  %v1691_v14 = vld [vmem:[%s2472_s1 + $0x284] ss:$16 sps:$4 sm:$0xff]   ;;  %v1694_v16 = vld [vmem:[%s2472_s1 + $0x280] ss:$16 sps:$4 sm:$0xff]   ;;  %v1740_v48 = vld [vmem:[%s2472_s1 + $0x88] ss:$16 sps:$4 sm:$0xff]  }
   0x9   :  { %693 = vmatprep.subr.bf16.mxu1 %v1685_v10  ;;  %v1695_v17 = vld [vmem:[%s2472_s1 + $0x64] ss:$16 sps:$4 sm:$0xff]   ;;  %v1699_v19 = vld [vmem:[%s2472_s1 + $0x60] ss:$16 sps:$4 sm:$0xff]   ;;  %v1748_v52 = vld [vmem:[%s2472_s1 + $0x6c] ss:$16 sps:$4 sm:$0xff]  }
   0xa   :  { %v1697_v18 = vld [vmem:[%s2472_s1 + $0x264] ss:$16 sps:$4 sm:$0xff]   ;;  %v1700_v20 = vld [vmem:[%s2472_s1 + $0x260] ss:$16 sps:$4 sm:$0xff]   ;;  %v1746_v53 = vld [vmem:[%s2472_s1 + $0x68] ss:$16 sps:$4 sm:$0xff]  }
   0xb   :  { %651 = vmatpush1.bf16.msra.mxu0 %v1687_v11  ;;  %v1701_v21 = vld [vmem:[%s2472_s1 + $0x44] ss:$16 sps:$4 sm:$0xff]   ;;  %v1705_v23 = vld [vmem:[%s2472_s1 + $0x40] ss:$16 sps:$4 sm:$0xff]   ;;  %v1754_v56 = vld [vmem:[%s2472_s1 + $0x4c] ss:$16 sps:$4 sm:$0xff]  }
   0xc   :  { %694 = vmatpush1.bf16.msra.mxu1 %v1688_v12  ;;  %652 = vmatprep.subr.bf16.mxu0 %v1689_v13  ;;  %v1703_v22 = vld [vmem:[%s2472_s1 + $0x244] ss:$16 sps:$4 sm:$0xff]   ;;  %v1706_v24 = vld [vmem:[%s2472_s1 + $0x240] ss:$16 sps:$4 sm:$0xff]   ;;  %v1752_v57 = vld [vmem:[%s2472_s1 + $0x48] ss:$16 sps:$4 sm:$0xff]  }
   0xd   :  { %695 = vmatprep.subr.bf16.mxu1 %v1691_v14  ;;  %v1707_v25 = vld [vmem:[%s2472_s1 + $0x24] ss:$16 sps:$4 sm:$0xff]   ;;  %v1711_v27 = vld [vmem:[%s2472_s1 + $0x20] ss:$16 sps:$4 sm:$0xff]   ;;  %v1760_v60 = vld [vmem:[%s2472_s1 + $0x2c] ss:$16 sps:$4 sm:$0xff]  }
   0xe   :  { %v1709_v26 = vld [vmem:[%s2472_s1 + $0x224] ss:$16 sps:$4 sm:$0xff]   ;;  %v1712_v28 = vld [vmem:[%s2472_s1 + $0x220] ss:$16 sps:$4 sm:$0xff]   ;;  %v1758_v61 = vld [vmem:[%s2472_s1 + $0x28] ss:$16 sps:$4 sm:$0xff]  }
   0xf   :  { %653 = vmatpush1.bf16.msra.mxu0 %v1693_v15  ;;  %v1713_v29 = vld [vmem:[%s2472_s1 + $0x4] ss:$16 sps:$4 sm:$0xff]   ;;  %v1717_v31 = vld [vmem:[%s2472_s1] ss:$16 sps:$4 sm:$0xff]   ;;  %v1766_v0 = vld [vmem:[%s2472_s1 + $0xc] ss:$16 sps:$4 sm:$0xff]  }
  0x10   :  { %696 = vmatpush1.bf16.msra.mxu1 %v1694_v16  ;;  %654 = vmatprep.subr.bf16.mxu0 %v1695_v17  ;;  %v1715_v30 = vld [vmem:[%s2472_s1 + $0x204] ss:$16 sps:$4 sm:$0xff]   ;;  %v1718_v32 = vld [vmem:[%s2472_s1 + $0x200] ss:$16 sps:$4 sm:$0xff]   ;;  %v1764_v1 = vld [vmem:[%s2472_s1 + $0x8] ss:$16 sps:$4 sm:$0xff]  }
  0x11   :  { %697 = vmatprep.subr.bf16.mxu1 %v1697_v18  ;;  %v1719_v33 = vld [vmem:[%s2472_s1 + $0x1e4] ss:$16 sps:$4 sm:$0xff]   ;;  %v1724_v37 = vld [vmem:[%s2472_s1 + $0x1e0] ss:$16 sps:$4 sm:$0xff]   ;;  %v1773_v4 = vld [vmem:[%s2472_s1 + $0x1ec] ss:$16 sps:$4 sm:$0xff]  }
  0x12   :  { %v2065_v35 = vld [vmem:[%s2471_s0 + $0x8] ss:$12 sps:$4 sm:$0xff]   ;;  %v1731_v41 = vld [vmem:[%s2472_s1 + $0x1c0] ss:$16 sps:$4 sm:$0xff]   ;;  %v1776_v5 = vld [vmem:[%s2472_s1 + $0x2ec] ss:$16 sps:$4 sm:$0xff]  }
  0x13   :  { %655 = vmatpush1.bf16.msra.mxu0 %v1699_v19  ;;  %v1726_v38 = vld [vmem:[%s2472_s1 + $0x1c4] ss:$16 sps:$4 sm:$0xff]   ;;  %v1737_v45 = vld [vmem:[%s2472_s1 + $0x1a0] ss:$16 sps:$4 sm:$0xff]   ;;  %v1771_v7 = vld [vmem:[%s2472_s1 + $0x1e8] ss:$16 sps:$4 sm:$0xff]  }
  0x14   :  { %698 = vmatpush1.bf16.msra.mxu1 %v1700_v20  ;;  %656 = vmatprep.subr.bf16.mxu0 %v1701_v21  ;;  %v1732_v42 = vld [vmem:[%s2472_s1 + $0x1a4] ss:$16 sps:$4 sm:$0xff]   ;;  %v1743_v49 = vld [vmem:[%s2472_s1 + $0x180] ss:$16 sps:$4 sm:$0xff]   ;;  %v1774_v8 = vld [vmem:[%s2472_s1 + $0x2e8] ss:$16 sps:$4 sm:$0xff]  }
  0x15   :  { %699 = vmatprep.subr.bf16.mxu1 %v1703_v22  ;;  %v1738_v46 = vld [vmem:[%s2472_s1 + $0x184] ss:$16 sps:$4 sm:$0xff]   ;;  %v1749_v54 = vld [vmem:[%s2472_s1 + $0x160] ss:$16 sps:$4 sm:$0xff]   ;;  %v1779_v9 = vld [vmem:[%s2472_s1 + $0x1cc] ss:$16 sps:$4 sm:$0xff]  }
  0x16   :  { %v1744_v50 = vld [vmem:[%s2472_s1 + $0x164] ss:$16 sps:$4 sm:$0xff]   ;;  %v1755_v58 = vld [vmem:[%s2472_s1 + $0x140] ss:$16 sps:$4 sm:$0xff]   ;;  %v1782_v10 = vld [vmem:[%s2472_s1 + $0x2cc] ss:$16 sps:$4 sm:$0xff]  }
  0x17   :  { %657 = vmatpush1.bf16.msra.mxu0 %v1705_v23  ;;  %v2116_v51 = vld [vmem:[%s2471_s0 + $0x4] ss:$12 sps:$4 sm:$0xff]   ;;  %v2174_v6 = vld [vmem:[%s2471_s0] ss:$12 sps:$4 sm:$0xff]   ;;  %v1777_v11 = vld [vmem:[%s2472_s1 + $0x1c8] ss:$16 sps:$4 sm:$0xff]  }
  0x18   :  { %700 = vmatpush1.bf16.msra.mxu1 %v1706_v24  ;;  %658 = vmatprep.subr.bf16.mxu0 %v1707_v25  ;;  %v1750_v55 = vld [vmem:[%s2472_s1 + $0x144] ss:$16 sps:$4 sm:$0xff]   ;;  %v1761_v62 = vld [vmem:[%s2472_s1 + $0x120] ss:$16 sps:$4 sm:$0xff]   ;;  %v1780_v12 = vld [vmem:[%s2472_s1 + $0x2c8] ss:$16 sps:$4 sm:$0xff]  }
  0x19   :  { %701 = vmatprep.subr.bf16.mxu1 %v1709_v26  ;;  %678 = vmatprep.mubr.bf16.mxu0 %v2116_v51  ;;  %v1756_v59 = vld [vmem:[%s2472_s1 + $0x124] ss:$16 sps:$4 sm:$0xff]   ;;  %v1767_v3 = vld [vmem:[%s2472_s1 + $0x100] ss:$16 sps:$4 sm:$0xff]   ;;  %v1785_v13 = vld [vmem:[%s2472_s1 + $0x1ac] ss:$16 sps:$4 sm:$0xff]  }
  0x1a   :  { %v1762_v63 = vld [vmem:[%s2472_s1 + $0x104] ss:$16 sps:$4 sm:$0xff]   ;;  %v1788_v14 = vld [vmem:[%s2472_s1 + $0x2ac] ss:$16 sps:$4 sm:$0xff]   ;;  %v1783_v15 = vld [vmem:[%s2472_s1 + $0x1a8] ss:$16 sps:$4 sm:$0xff]  }
  0x1b   :  { %659 = vmatpush1.bf16.msra.mxu0 %v1711_v27  ;;  %v1786_v16 = vld [vmem:[%s2472_s1 + $0x2a8] ss:$16 sps:$4 sm:$0xff]   ;;  %v1791_v17 = vld [vmem:[%s2472_s1 + $0x18c] ss:$16 sps:$4 sm:$0xff]  }
  0x1c   :  { %702 = vmatpush1.bf16.msra.mxu1 %v1712_v28  ;;  %660 = vmatprep.subr.bf16.mxu0 %v1713_v29  ;;  %v1794_v18 = vld [vmem:[%s2472_s1 + $0x28c] ss:$16 sps:$4 sm:$0xff]   ;;  %v1789_v19 = vld [vmem:[%s2472_s1 + $0x188] ss:$16 sps:$4 sm:$0xff]  }
  0x1d   :  { %703 = vmatprep.subr.bf16.mxu1 %v1715_v30  ;;  %v1792_v20 = vld [vmem:[%s2472_s1 + $0x288] ss:$16 sps:$4 sm:$0xff]   ;;  %v1797_v21 = vld [vmem:[%s2472_s1 + $0x16c] ss:$16 sps:$4 sm:$0xff]  }
  0x1e   :  { %v1800_v22 = vld [vmem:[%s2472_s1 + $0x26c] ss:$16 sps:$4 sm:$0xff]   ;;  %v1795_v23 = vld [vmem:[%s2472_s1 + $0x168] ss:$16 sps:$4 sm:$0xff]  }
  0x1f   :  { %661 = vmatpush1.bf16.msra.mxu0 %v1717_v31  ;;  %v1798_v24 = vld [vmem:[%s2472_s1 + $0x268] ss:$16 sps:$4 sm:$0xff]   ;;  %v1803_v25 = vld [vmem:[%s2472_s1 + $0x14c] ss:$16 sps:$4 sm:$0xff]  }
  0x20   :  { %704 = vmatpush1.bf16.msra.mxu1 %v1718_v32  ;;  %662 = vmatprep.subr.bf16.mxu0 %v1719_v33  ;;  %v1806_v26 = vld [vmem:[%s2472_s1 + $0x24c] ss:$16 sps:$4 sm:$0xff]   ;;  %v1801_v27 = vld [vmem:[%s2472_s1 + $0x148] ss:$16 sps:$4 sm:$0xff]  }
  0x21   :  { %732 = vmatprep.subr.bf16.mxu1 %v1723_v34  ;;  %v1804_v28 = vld [vmem:[%s2472_s1 + $0x248] ss:$16 sps:$4 sm:$0xff]   ;;  %v1809_v29 = vld [vmem:[%s2472_s1 + $0x12c] ss:$16 sps:$4 sm:$0xff]  }
  0x22   :  { %v1812_v30 = vld [vmem:[%s2472_s1 + $0x22c] ss:$16 sps:$4 sm:$0xff]   ;;  %v1807_v31 = vld [vmem:[%s2472_s1 + $0x128] ss:$16 sps:$4 sm:$0xff]  }
  0x23   :  { %722 = vmatmul.mubr.bf16.vlgmr.msra.gmra.mxu1 %v2065_v35  ;;  %663 = vmatpush2.bf16.msra.mxu0 %v1724_v37  ;;  %v1810_v32 = vld [vmem:[%s2472_s1 + $0x228] ss:$16 sps:$4 sm:$0xff]   ;;  %v1815_v33 = vld [vmem:[%s2472_s1 + $0x10c] ss:$16 sps:$4 sm:$0xff]  }
  0x24   :  { %733 = vmatpush1.bf16.msra.mxu1 %v1721_v36  ;;  %664 = vmatprep.subr.bf16.mxu0 %v1726_v38  ;;  %v1818_v34 = vld [vmem:[%s2472_s1 + $0x20c] ss:$16 sps:$4 sm:$0xff]   ;;  %v1813_v36 = vld [vmem:[%s2472_s1 + $0x108] ss:$16 sps:$4 sm:$0xff]  }
  0x25   :  { %734 = vmatprep.subr.bf16.mxu1 %v1730_v39  ;;  %764 = vmatprep.mubr.bf16.mxu1 %v2116_v51  ;;  %v1816_v37 = vld [vmem:[%s2472_s1 + $0x208] ss:$16 sps:$4 sm:$0xff]  }
  0x26   :  { %v1819_v38 = vld [vmem:[%s2474_s3 + $0x78] sm:$0xff]  }
  0x27   :  { %665 = vmatpush2.bf16.msra.mxu0 %v1731_v41  ;;  %v1820_v39 = vld [vmem:[%s2474_s3 + $0x38] sm:$0xff]   ;;  %v1822_v41 = vld [vmem:[%s2474_s3 + $0x70] sm:$0xff]  }
  0x28   :  { %735 = vmatpush1.bf16.msra.mxu1 %v1728_v40  ;;  %666 = vmatprep.subr.bf16.mxu0 %v1732_v42  ;;  %v1821_v40 = vld [vmem:[%s2474_s3 + $0xb8] sm:$0xff]   ;;  %v1914_v42 = vmov 0.0  }
  0x29   :  { %736 = vmatprep.subr.bf16.mxu1 %v1736_v43  ;;  %v1823_v43 = vld [vmem:[%s2474_s3 + $0x30] sm:$0xff]  }
  0x2b   :  { %667 = vmatpush2.bf16.msra.mxu0 %v1737_v45  ;;  %v1825_v45 = vld [vmem:[%s2474_s3 + $0x68] sm:$0xff]  }
  0x2c   :  { %737 = vmatpush1.bf16.msra.mxu1 %v1734_v44  ;;  %668 = vmatprep.subr.bf16.mxu0 %v1738_v46  ;;  %v1824_v44 = vld [vmem:[%s2474_s3 + $0xb0] sm:$0xff]  }
  0x2d   :  { %738 = vmatprep.subr.bf16.mxu1 %v1742_v47 }
  0x2f   :  { %669 = vmatpush2.bf16.msra.mxu0 %v1743_v49 }
  0x30   :  { %739 = vmatpush1.bf16.msra.mxu1 %v1740_v48  ;;  %670 = vmatprep.subr.bf16.mxu0 %v1744_v50 }
  0x31   :  { %740 = vmatprep.subr.bf16.mxu1 %v1748_v52 }
  0x33   :  { %671 = vmatpush2.bf16.msra.mxu0 %v1749_v54 }
  0x34   :  { %741 = vmatpush1.bf16.msra.mxu1 %v1746_v53  ;;  %672 = vmatprep.subr.bf16.mxu0 %v1750_v55 }
  0x35   :  { %742 = vmatprep.subr.bf16.mxu1 %v1754_v56 }
  0x37   :  { %673 = vmatpush2.bf16.msra.mxu0 %v1755_v58 }
  0x38   :  { %743 = vmatpush1.bf16.msra.mxu1 %v1752_v57  ;;  %674 = vmatprep.subr.bf16.mxu0 %v1756_v59 }
  0x39   :  { %744 = vmatprep.subr.bf16.mxu1 %v1760_v60 }
  0x3b   :  { %675 = vmatpush2.bf16.msra.mxu0 %v1761_v62 }
  0x3c   :  { %745 = vmatpush1.bf16.msra.mxu1 %v1758_v61  ;;  %676 = vmatprep.subr.bf16.mxu0 %v1762_v63 }
  0x3d   :  { %746 = vmatprep.subr.bf16.mxu1 %v1766_v0 }
  0x3f   :  { %677 = vmatpush2.bf16.msra.mxu0 %v1767_v3 }
  0x40   :  { %747 = vmatpush1.bf16.msra.mxu1 %v1764_v1  ;;  %775 = vmatprep.subr.bf16.mxu0 %v1776_v5 }
  0x41   :  { %748 = vmatprep.subr.bf16.mxu1 %v1773_v4 }
  0x42   :  { %679 = vmatmul.mubr.bf16.vlgmr.msra.gmra.mxu0 %v2174_v6 }
  0x43   :  { %776 = vmatpush1.bf16.msra.mxu0 %v1774_v8  ;;  %807 = vmatprep.mubr.bf16.mxu0 %v1913_v2 }
  0x44   :  { %749 = vmatpush2.bf16.msra.mxu1 %v1771_v7  ;;  %777 = vmatprep.subr.bf16.mxu0 %v1782_v10 }
  0x45   :  { %750 = vmatprep.subr.bf16.mxu1 %v1779_v9 }
  0x47   :  { %778 = vmatpush1.bf16.msra.mxu0 %v1780_v12 }
  0x48   :  { %751 = vmatpush2.bf16.msra.mxu1 %v1777_v11  ;;  %779 = vmatprep.subr.bf16.mxu0 %v1788_v14 }
  0x49   :  { %752 = vmatprep.subr.bf16.mxu1 %v1785_v13 }
  0x4b   :  { %780 = vmatpush1.bf16.msra.mxu0 %v1786_v16 }
  0x4c   :  { %753 = vmatpush2.bf16.msra.mxu1 %v1783_v15  ;;  %781 = vmatprep.subr.bf16.mxu0 %v1794_v18 }
  0x4d   :  { %754 = vmatprep.subr.bf16.mxu1 %v1791_v17 }
  0x4f   :  { %782 = vmatpush1.bf16.msra.mxu0 %v1792_v20 }
  0x50   :  { %755 = vmatpush2.bf16.msra.mxu1 %v1789_v19  ;;  %783 = vmatprep.subr.bf16.mxu0 %v1800_v22 }
  0x51   :  { %756 = vmatprep.subr.bf16.mxu1 %v1797_v21 }
  0x53   :  { %784 = vmatpush1.bf16.msra.mxu0 %v1798_v24 }
  0x54   :  { %757 = vmatpush2.bf16.msra.mxu1 %v1795_v23  ;;  %785 = vmatprep.subr.bf16.mxu0 %v1806_v26 }
  0x55   :  { %758 = vmatprep.subr.bf16.mxu1 %v1803_v25 }
  0x57   :  { %786 = vmatpush1.bf16.msra.mxu0 %v1804_v28 }
  0x58   :  { %759 = vmatpush2.bf16.msra.mxu1 %v1801_v27  ;;  %787 = vmatprep.subr.bf16.mxu0 %v1812_v30 }
  0x59   :  { %760 = vmatprep.subr.bf16.mxu1 %v1809_v29 }
  0x5b   :  { %788 = vmatpush1.bf16.msra.mxu0 %v1810_v32 }
  0x5c   :  { %761 = vmatpush2.bf16.msra.mxu1 %v1807_v31  ;;  %789 = vmatprep.subr.bf16.mxu0 %v1818_v34 }
  0x5d   :  { %762 = vmatprep.subr.bf16.mxu1 %v1815_v33 }
  0x5f   :  { %790 = vmatpush1.bf16.msra.mxu0 %v1816_v37 }
  0x60   :  { %763 = vmatpush2.bf16.msra.mxu1 %v1813_v36  ;;  %1614 = vmatprep.subr.bf16.mxu0 %v1819_v38 }
  0x61   :  { %1645 = vmatprep.subr.bf16.mxu1 %v1914_v42 }
  0x62   :  { %808 = vmatmul.mubr.bf16.vlgmr.msra.gmra.mxu0 %v2065_v35 }
  0x63   :  { %765 = vmatmul.mubr.bf16.vlgmr.msra.gmra.mxu1 %v2174_v6  ;;  %1615 = vmatpush3.bf16.msra.mxu0 %v1820_v39 }
  0x64   :  { %1646 = vmatpush3.bf16.msra.mxu1 %v1821_v40  ;;  %1616 = vmatprep.subr.bf16.mxu0 %v1822_v41 }
  0x65   :  { %1647 = vmatprep.subr.bf16.mxu1 %v1914_v42 }
  0x66   :  { %12 = vsyncpa [#allocation3], 0  ;;  %1057 = vmatprep.mubr.bf16.mxu0 %v2116_v51  ;;  %vm1915_vm0 = vmmov 0   ;;  %v1826_v46 = vld [vmem:[%s2474_s3 + $0x28] sm:$0xff]   ;;  %v1828_v48 = vld [vmem:[%s2474_s3 + $0x60] sm:$0xff]   ;;  %v130_v30 = vlaneseq }
  0x67   :  { %1661 = vmatprep.mubr.msk.bf16.mxu1 %vm1915_vm0, %v1914_v42  ;;  %1617 = vmatpush3.bf16.msra.mxu0 %v1823_v43  ;;  %v1827_v47 = vld [vmem:[%s2474_s3 + $0xa8] sm:$0xff]   ;;  %v1829_v49 = vld [vmem:[%s2474_s3 + $0x20] sm:$0xff]   ;;  %v1831_v51 = vld [vmem:[%s2474_s3 + $0x58] sm:$0xff]  }
  0x68   :  { %1648 = vmatpush3.bf16.msra.mxu1 %v1824_v44  ;;  %1618 = vmatprep.subr.bf16.mxu0 %v1825_v45  ;;  %v1830_v50 = vld [vmem:[%s2474_s3 + $0xa0] sm:$0xff]   ;;  %v1832_v52 = vld [vmem:[%s2474_s3 + $0x18] sm:$0xff]   ;;  %v1834_v54 = vld [vmem:[%s2474_s3 + $0x50] sm:$0xff]   ;;  %v2443_v31 = vshrl.u32 %v130_v30, 7 }
  0x69   :  { %1649 = vmatprep.subr.bf16.mxu1 %v1914_v42  ;;  %v1833_v53 = vld [vmem:[%s2474_s3 + $0x98] sm:$0xff]   ;;  %v1835_v55 = vld [vmem:[%s2474_s3 + $0x10] sm:$0xff]   ;;  %v1837_v57 = vld [vmem:[%s2474_s3 + $0x48] sm:$0xff]  }
  0x6a   :  { %v1836_v56 = vld [vmem:[%s2474_s3 + $0x90] sm:$0xff]   ;;  %v1838_v58 = vld [vmem:[%s2474_s3 + $0x8] sm:$0xff]   ;;  %v1840_v60 = vld [vmem:[%s2474_s3 + $0x40] sm:$0xff]   ;;  %v132_v32 = vsub.s32 0, %v2443_v31  ;;  %v136_v34 = vsub.s32 1, %v2443_v31 }
  0x6b   :  { %1619 = vmatpush3.bf16.msra.mxu0 %v1826_v46  ;;  %v1839_v59 = vld [vmem:[%s2474_s3 + $0x88] sm:$0xff]   ;;  %v1841_v61 = vld [vmem:[%s2474_s3] sm:$0xff]  }
  0x6c   :  { %1650 = vmatpush3.bf16.msra.mxu1 %v1827_v47  ;;  %1620 = vmatprep.subr.bf16.mxu0 %v1828_v48  ;;  %v1842_v62 = vld [vmem:[%s2474_s3 + $0x80] sm:$0xff]   ;;  %v1846_v1 = vld [vmem:[%s2476_s5 + $0xe8] ss:$16 sps:$4 sm:$0xff]   ;;  %v1854_v3 = vld [vmem:[%s2476_s5 + $0xcc] ss:$16 sps:$4 sm:$0xff]  }
  0x6d   :  { %1651 = vmatprep.subr.bf16.mxu1 %v1914_v42  ;;  %v1843_v63 = vld [vmem:[%s2476_s5 + $0xe0] ss:$16 sps:$4 sm:$0xff]   ;;  %v1845_v0 = vld [vmem:[%s2476_s5 + $0xe4] ss:$16 sps:$4 sm:$0xff]   ;;  %v1852_v5 = vld [vmem:[%s2476_s5 + $0xc8] ss:$16 sps:$4 sm:$0xff]  }
  0x6e   :  { %v1849_v4 = vld [vmem:[%s2476_s5 + $0xc0] ss:$16 sps:$4 sm:$0xff]   ;;  %v1860_v7 = vld [vmem:[%s2476_s5 + $0xac] ss:$16 sps:$4 sm:$0xff]   ;;  %v1858_v9 = vld [vmem:[%s2476_s5 + $0xa8] ss:$16 sps:$4 sm:$0xff]  }
  0x6f   :  { %1621 = vmatpush3.bf16.msra.mxu0 %v1829_v49  ;;  %v1855_v8 = vld [vmem:[%s2476_s5 + $0xa0] ss:$16 sps:$4 sm:$0xff]   ;;  %v1863_v10 = vld [vmem:[%s2476_s5 + $0x84] ss:$16 sps:$4 sm:$0xff]   ;;  %v1866_v11 = vld [vmem:[%s2476_s5 + $0x8c] ss:$16 sps:$4 sm:$0xff]  }
  0x70   :  { %1652 = vmatpush3.bf16.msra.mxu1 %v1830_v50  ;;  %1622 = vmatprep.subr.bf16.mxu0 %v1831_v51  ;;  %v1861_v12 = vld [vmem:[%s2476_s5 + $0x80] ss:$16 sps:$4 sm:$0xff]   ;;  %v1864_v13 = vld [vmem:[%s2476_s5 + $0x88] ss:$16 sps:$4 sm:$0xff]   ;;  %v1869_v14 = vld [vmem:[%s2476_s5 + $0x64] ss:$16 sps:$4 sm:$0xff]  }
  0x71   :  { %1653 = vmatprep.subr.bf16.mxu1 %v1914_v42  ;;  %v1872_v15 = vld [vmem:[%s2476_s5 + $0x6c] ss:$16 sps:$4 sm:$0xff]   ;;  %v1867_v16 = vld [vmem:[%s2476_s5 + $0x60] ss:$16 sps:$4 sm:$0xff]   ;;  %v1870_v17 = vld [vmem:[%s2476_s5 + $0x68] ss:$16 sps:$4 sm:$0xff]  }
  0x72   :  { %v1875_v18 = vld [vmem:[%s2476_s5 + $0x44] ss:$16 sps:$4 sm:$0xff]   ;;  %v1878_v19 = vld [vmem:[%s2476_s5 + $0x4c] ss:$16 sps:$4 sm:$0xff]   ;;  %v1873_v20 = vld [vmem:[%s2476_s5 + $0x40] ss:$16 sps:$4 sm:$0xff]  }
  0x73   :  { %1623 = vmatpush3.bf16.msra.mxu0 %v1832_v52  ;;  %v1876_v21 = vld [vmem:[%s2476_s5 + $0x48] ss:$16 sps:$4 sm:$0xff]   ;;  %v1881_v22 = vld [vmem:[%s2476_s5 + $0x24] ss:$16 sps:$4 sm:$0xff]   ;;  %v1884_v23 = vld [vmem:[%s2476_s5 + $0x2c] ss:$16 sps:$4 sm:$0xff]  }
  0x74   :  { %1654 = vmatpush3.bf16.msra.mxu1 %v1833_v53  ;;  %1624 = vmatprep.subr.bf16.mxu0 %v1834_v54  ;;  %v1879_v24 = vld [vmem:[%s2476_s5 + $0x20] ss:$16 sps:$4 sm:$0xff]   ;;  %v1882_v25 = vld [vmem:[%s2476_s5 + $0x28] ss:$16 sps:$4 sm:$0xff]   ;;  %v1887_v26 = vld [vmem:[%s2476_s5 + $0x4] ss:$16 sps:$4 sm:$0xff]  }
  0x75   :  { %1655 = vmatprep.subr.bf16.mxu1 %v1914_v42  ;;  %v1890_v27 = vld [vmem:[%s2476_s5 + $0xc] ss:$16 sps:$4 sm:$0xff]   ;;  %v1885_v28 = vld [vmem:[%s2476_s5] ss:$16 sps:$4 sm:$0xff]   ;;  %v1888_v29 = vld [vmem:[%s2476_s5 + $0x8] ss:$16 sps:$4 sm:$0xff]  }
  0x76   :  { %v128_v33 = vld [vmem:[%s2473_s2] sm:$0xf]  ;;  %v140_v54 = vsub.s32 2, %v2443_v31 }
  0x77   :  { %1625 = vmatpush3.bf16.msra.mxu0 %v1835_v55  ;;  %v133_v37 = vrot.slane %v128_v33, %v132_v32  ;;  %v137_v38 = vrot.slane %v128_v33, %v136_v34  ;;  %v144_v55 = vsub.s32 3, %v2443_v31 }
  0x78   :  { %1656 = vmatpush3.bf16.msra.mxu1 %v1836_v56  ;;  %1626 = vmatprep.subr.bf16.mxu0 %v1837_v57  ;;  %v141_v56 = vrot.slane %v128_v33, %v140_v54 }
  0x79   :  { %1657 = vmatprep.subr.bf16.mxu1 %v1914_v42  ;;  %v145_v57 = vrot.slane %v128_v33, %v144_v55 }
  0x7b   :  { %1627 = vmatpush3.bf16.msra.mxu0 %v1838_v58 }
  0x7c   :  { %1658 = vmatpush3.bf16.msra.mxu1 %v1839_v59  ;;  %1628 = vmatprep.subr.bf16.mxu0 %v1840_v60 }
  0x7d   :  { %1659 = vmatprep.subr.bf16.mxu1 %v1914_v42 }
  0x7f   :  { %1629 = vmatpush3.bf16.msra.mxu0 %v1841_v61 }
  0x80   :  { %1660 = vmatpush3.bf16.msra.mxu1 %v1842_v62  ;;  %1302 = vmatprep.subr.bf16.mxu0 %v1845_v0 }
  0x82   :  { %1058 = vmatmul.mubr.bf16.vlgmr.msra.gmra.mxu0 %v2174_v6  ;;  %v1857_v6 = vld [vmem:[%s2476_s5 + $0xa4] ss:$16 sps:$4 sm:$0xff]  }
  0x83   :  { %1662 = vmatmul.mubr.bf16.vlgmr.msra.gmra.mxu1 %v2065_v35  ;;  %1334 = vmatprep.mubr.bf16.mxu0 %v1913_v2  ;;  %v1848_v35 = vld [vmem:[%s2476_s5 + $0xec] ss:$16 sps:$4 sm:$0xff]  }
  0x84   :  { %1377 = vmatprep.mubr.bf16.mxu1 %v1913_v2  ;;  %v1851_v2 = vld [vmem:[%s2476_s5 + $0xc4] ss:$16 sps:$4 sm:$0xff]   ;;  %1345 = vmatprep.subr.bf16.mxu1 %v1848_v35 }
  0x85   :  { %1303 = vmatpush1.bf16.msra.mxu0 %v1843_v63  ;;  %1346 = vmatpush1.bf16.msra.mxu1 %v1846_v1 }
  0x86   :  { %1304 = vmatprep.subr.bf16.mxu0 %v1851_v2  ;;  %1347 = vmatprep.subr.bf16.mxu1 %v1854_v3 }
  0x89   :  { %1305 = vmatpush1.bf16.msra.mxu0 %v1849_v4  ;;  %1348 = vmatpush1.bf16.msra.mxu1 %v1852_v5 }
  0x8a   :  { %1306 = vmatprep.subr.bf16.mxu0 %v1857_v6  ;;  %1349 = vmatprep.subr.bf16.mxu1 %v1860_v7 }
  0x8d   :  { %1307 = vmatpush1.bf16.msra.mxu0 %v1855_v8  ;;  %1350 = vmatpush1.bf16.msra.mxu1 %v1858_v9 }
  0x8e   :  { %1308 = vmatprep.subr.bf16.mxu0 %v1863_v10  ;;  %1351 = vmatprep.subr.bf16.mxu1 %v1866_v11  ;;  %v1557_v11 = vld [vmem:[%s2475_s4] ss:$0 sm:$0xff]  ;;  %s1916_s4 = smov [#allocation2]  }
  0x91   :  { %1309 = vmatpush1.bf16.msra.mxu0 %v1861_v12  ;;  %1352 = vmatpush1.bf16.msra.mxu1 %v1864_v13 }
  0x92   :  { %1310 = vmatprep.subr.bf16.mxu0 %v1869_v14  ;;  %1353 = vmatprep.subr.bf16.mxu1 %v1872_v15 }
  0x95   :  { %1311 = vmatpush1.bf16.msra.mxu0 %v1867_v16  ;;  %1354 = vmatpush1.bf16.msra.mxu1 %v1870_v17 }
  0x96   :  { %1312 = vmatprep.subr.bf16.mxu0 %v1875_v18  ;;  %1355 = vmatprep.subr.bf16.mxu1 %v1878_v19 }
  0x99   :  { %1313 = vmatpush1.bf16.msra.mxu0 %v1873_v20  ;;  %1356 = vmatpush1.bf16.msra.mxu1 %v1876_v21 }
  0x9a   :  { %1314 = vmatprep.subr.bf16.mxu0 %v1881_v22  ;;  %1357 = vmatprep.subr.bf16.mxu1 %v1884_v23 }
  0x9d   :  { %1315 = vmatpush1.bf16.msra.mxu0 %v1879_v24  ;;  %1358 = vmatpush1.bf16.msra.mxu1 %v1882_v25 }
  0x9e   :  { %1316 = vmatprep.subr.bf16.mxu0 %v1887_v26  ;;  %1359 = vmatprep.subr.bf16.mxu1 %v1890_v27  ;;  %v1404_v27 = vld [vmem:[%s2477_s6] sm:$0xf]  ;;  %s1447_s6 = sshll.u32 %s1916_s4, 4  ;;  %s1448_s6 = int_to_ptr.vmem [resolvable:$true] %s1447_s6 }
  0x9f   :  { %s1891_s24 = scalar_lea.vmem %s1448_s6, 1024  ;;  %p1896_p1 = scmp.lt.s32.totalorder %s1448_s6, %s1448_s6 }
  0xa0   :  { %p1892_p0 = scmp.ne.s32.totalorder %s1448_s6, %s1891_s24  ;;  %p1897_p2 = scmp.lt.s32.totalorder %s1891_s24, %s1891_s24 }
  0xa1   :  { %1317 = vmatpush1.bf16.msra.mxu0 %v1885_v28  ;;  %1360 = vmatpush1.bf16.msra.mxu1 %v1888_v29  ;;  %v1409_v28 = vrot.slane %v1404_v27, %v132_v32  ;;  %v1417_v29 = vrot.slane %v1404_v27, %v140_v54 }
  0xa2   :  { %p1898_p3 = por %p1897_p2, %p1896_p1 }
  0xa4   :  { %p1899_p4 = pnand %p1898_p3, %p1892_p0 }
  0xe3   :  { %v723_v36 = vpop.f32.mrf.mxu1 }
  0xe5   :  { %v725_v39 = vpop.f32.mrf.mxu1 }
  0xe7   :  { %v727_v45 = vpop.f32.mrf.mxu1 }
  0xe9   :  { %v729_v52 = vpop.f32.mrf.mxu1 }
 0x102   :  { %v680_v40 = vpop.f32.mrf.mxu0 }
 0x103   :  { %v681_v41 = vadd.f32 %v680_v40, %v133_v37 }
 0x104   :  { %v682_v42 = vpop.f32.mrf.mxu0 }
 0x105   :  { %v724_v43 = vadd.f32 %v723_v36, %v681_v41  ;;  %v683_v44 = vadd.f32 %v682_v42, %v137_v38 }
 0x106   :  { %v684_v46 = vpop.f32.mrf.mxu0 }
 0x107   :  { %v726_v47 = vadd.f32 %v725_v39, %v683_v44  ;;  %v685_v48 = vadd.f32 %v684_v46, %v133_v37  ;;  %v1421_v39 = vrot.slane %v1404_v27, %v144_v55 }
 0x108   :  { %v686_v49 = vpop.f32.mrf.mxu0 }
 0x109   :  { %v2452_v50 = vadd.f32 %v727_v45, %v685_v48  ;;  %v687_v51 = vadd.f32 %v686_v49, %v137_v38  ;;  %v1413_v38 = vrot.slane %v1404_v27, %v136_v34 }
 0x10b   :  { %v2454_v53 = vadd.f32 %v729_v52, %v687_v51 }
 0x122   :  { %v809_v59 = vpop.f32.mrf.mxu0 }
 0x123   :  { %v766_v58 = vpop.f32.mrf.mxu1 }
 0x124   :  { %v767_v60 = vadd.f32 %v766_v58, %v141_v56  ;;  %v811_v62 = vpop.f32.mrf.mxu0 }
 0x125   :  { %v768_v61 = vpop.f32.mrf.mxu1 }
 0x126   :  { %v810_v63 = vadd.f32 %v809_v59, %v767_v60  ;;  %v769_v0 = vadd.f32 %v768_v61, %v145_v57  ;;  %v813_v35 = vpop.f32.mrf.mxu0 }
 0x127   :  { %v770_v1 = vpop.f32.mrf.mxu1 }
 0x128   :  { %v812_v2 = vadd.f32 %v811_v62, %v769_v0  ;;  %v771_v3 = vadd.f32 %v770_v1, %v141_v56  ;;  %v815_v7 = vpop.f32.mrf.mxu0 }
 0x129   :  { %v772_v4 = vpop.f32.mrf.mxu1 }
 0x12a   :  { %v814_v5 = vadd.f32 %v813_v35, %v771_v3  ;;  %v773_v6 = vadd.f32 %v772_v4, %v145_v57 }
 0x12c   :  { %v816_v8 = vadd.f32 %v815_v7, %v773_v6 }
 0x142   :  { %v1630_v9 = vpop.f32.mrf.mxu0 }
 0x143   :  { %v1100_v10 = vpop.f32.mrf.mxu1 }
 0x144   :  { %v1631_v12 = vpop.f32.mrf.mxu0 }
 0x145   :  { %v1663_v13 = vpop.f32.mrf.mxu1  ;;  %v1632_v14 = vadd.f32 %v1631_v12, %v1630_v9 }
 0x146   :  { %v1633_v15 = vpop.f32.mrf.mxu0 }
 0x147   :  { %v1103_v16 = vpop.f32.mrf.mxu1  ;;  %v1060_v17 = vadd.f32 %v1632_v14, %v1557_v11 }
 0x148   :  { %v1634_v18 = vpop.f32.mrf.mxu0 }
 0x149   :  { %v1664_v19 = vpop.f32.mrf.mxu1  ;;  %v1635_v20 = vadd.f32 %v1634_v18, %v1633_v15  ;;  %v1101_v21 = vadd.f32 %v1100_v10, %v1060_v17 }
 0x14b   :  { %v1063_v22 = vadd.f32 %v1635_v20, %v1557_v11  ;;  %v1107_v24 = vmax.f32 %v1101_v21, 0.0 }
 0x14d   :  { %v1104_v23 = vadd.f32 %v1103_v16, %v1063_v22 }
 0x14f   :  { %v1108_v25 = vmax.f32 %v1104_v23, 0.0 }
 0x151   :  { %v1109_v26 = vpack.c.bf16 %v1108_v25, %v1107_v24 }
 0x153   :  { %1335 = vmatmul.mubr.bf16.vlgmr.msra.gmra.mxu0 %v1109_v26  ;;  %1378 = vmatmul.mubr.bf16.vlgmr.msra.gmra.mxu1 %v1109_v26 }
 0x213   :  { %v1336_v30 = vpop.f32.mrf.mxu0  ;;  %v1379_v33 = vpop.f32.mrf.mxu1 }
 0x214   :  { %v1396_v36 = vadd.f32 %v1336_v30, %v724_v43  ;;  %v1398_v37 = vadd.f32 %v1379_v33, %v810_v63 }
 0x215   :  { %v1338_v40 = vpop.f32.mrf.mxu0  ;;  %v1381_v41 = vpop.f32.mrf.mxu1 }
 0x216   :  { %v1426_v42 = vadd.f32 %v1409_v28, %v1396_v36  ;;  %v1428_v44 = vadd.f32 %v1417_v29, %v1398_v37  ;;  %v1397_v45 = vadd.f32 %v1338_v40, %v726_v47  ;;  %v1399_v46 = vadd.f32 %v1381_v41, %v812_v2 }
 0x217   :  { %v1340_v48 = vpop.f32.mrf.mxu0  ;;  %v1383_v49 = vpop.f32.mrf.mxu1 }
 0x218   :  { %1434 = vst [vmem:[#allocation2] sm:$0xff] %v1426_v42  ;;  %1436 = vst [vmem:[#allocation2 + $0x10] sm:$0xff] %v1428_v44  ;;  %v1427_v32 = vadd.f32 %v1413_v38, %v1397_v45  ;;  %v1429_v51 = vadd.f32 %v1421_v39, %v1399_v46  ;;  %v1400_v52 = vadd.f32 %v1340_v48, %v2452_v50 }
 0x219   :  { %v1402_v43 = vadd.f32 %v1383_v49, %v814_v5  ;;  %v1342_v31 = vpop.f32.mrf.mxu0  ;;  %v1385_v34 = vpop.f32.mrf.mxu1 }
 0x21a   :  { %1435 = vst [vmem:[#allocation2 + $0x8] sm:$0xff] %v1427_v32  ;;  %1437 = vst [vmem:[#allocation2 + $0x18] sm:$0xff] %v1429_v51  ;;  %v1430_v54 = vadd.f32 %v1409_v28, %v1400_v52  ;;  %v1401_v47 = vadd.f32 %v1342_v31, %v2454_v53  ;;  %v1403_v56 = vadd.f32 %v1385_v34, %v816_v8 }
 0x21b   :  { %v1432_v55 = vadd.f32 %v1417_v29, %v1402_v43 }
 0x21c   :  { %1438 = vst [vmem:[#allocation2 + $0x20] sm:$0xff] %v1430_v54  ;;  %v1431_v57 = vadd.f32 %v1413_v38, %v1401_v47  ;;  %v1433_v58 = vadd.f32 %v1421_v39, %v1403_v56 }
 0x21d   :  { %1440 = vst [vmem:[#allocation2 + $0x30] sm:$0xff] %v1432_v55 }
 0x21e   :  { %1439 = vst [vmem:[#allocation2 + $0x28] sm:$0xff] %v1431_v57  ;;  %1441 = vst [vmem:[#allocation2 + $0x38] sm:$0xff] %v1433_v58 }
 0x21f   :  { %1902 = shalt.err (!%p1899_p4)
}
 0x220   :  { %s1917_s25 = smov 512   ;;  %s1918_s26 = smov 32  }
 0x221   :  { %1453 = dma.vmem_to_hbm [thread:$0]  %s1448_s6, 1024, %s2478_s7, [#allocation3], %s1917_s25, %s1917_s25, %s1918_s26  }
 0x222   :  { %1911 = dma.done.wait [#allocation3], 1024  }
 0x223   :  { %1912 = vsyncadd [#allocation3], 4294966272 }
 0x224   :  { %1457 = vsyncpa [#allocation3], 1 }

</bundles_post_ra>
